<compile_context>
chip_gen: v6e
topology: v6e:2x2x1
jax: 0.10.0
libtpu: 0.0.40
codegen_flags: <defaults>
</compile_context>

<pallas_src>
import functools

import jax
import jax.numpy as jnp
from jax import lax
from jax.experimental import pallas as pl
from jax.experimental.pallas import tpu as pltpu


def _l2_normalize(x):
    # torch F.normalize(p=2): x / max(||x||, 1e-12)
    ssq = jnp.sum(x * x, axis=-1, keepdims=True)
    return x * lax.rsqrt(jnp.maximum(ssq, 1e-24))


def _pick_row_block(bsc):
    """Largest row block <= 256 dividing bsc (bsc is a multiple of 8)."""
    if bsc <= 256:
        return bsc
    rb = 256
    while bsc % rb:
        rb -= 8
    return rb


def _vmem_capacity_bytes():
    try:
        info = pltpu.get_tpu_info()
        for name in ("vmem_capacity_bytes", "vmem_size_bytes", "vmem_bytes"):
            cap = getattr(info, name, None)
            if cap:
                return int(cap)
    except Exception:
        pass
    return 64 << 20   # conservative default: v7x per-TensorCore VMEM


def vlap_kernel(emb_v_ref, vmean_ref, emb_t_ref, w_ref, b_ref, vocab_ref,
                invn_ref, klogp_ref, loss_ref, proj_ref, xn_sc, code_sc,
                *, bsc, epsilon, temperature, row_block, lane_aligned):
    j = pl.program_id(1)                 # vocab-tile index ("arbitrary" axis)
    v_tile = vocab_ref.shape[0]

    # ---- once per batch chunk: projection + normalized query rows ----
    @pl.when(j == 0)
    def _project():
        w = w_ref[...].astype(emb_v_ref.dtype)
        bias = b_ref[...].astype(jnp.float32)
        # emb_v (bsc*ns, D) contracted with W (P, D) on last dims -> (bsc*ns, P)
        proj = lax.dot_general(emb_v_ref[...], w,
                               dimension_numbers=(((1,), (1,)), ((), ())),
                               preferred_element_type=jnp.float32) + bias
        proj_ref[...] = proj.astype(proj_ref.dtype)
        # mean over Ns commutes with the Linear: project the wrapper-reduced
        # per-sample mean -> no store/strided-reload of proj_ref needed.
        vproj = lax.dot_general(vmean_ref[...], w,
                                dimension_numbers=(((1,), (1,)), ((), ())),
                                preferred_element_type=jnp.float32) + bias
        xn_sc[0:bsc, :] = _l2_normalize(vproj).astype(xn_sc.dtype)
        xn_sc[bsc:2 * bsc, :] = _l2_normalize(
            emb_t_ref[...].astype(jnp.float32)).astype(xn_sc.dtype)

    # ---- every vocab tile: fused code_v/code_t matmul + inv-norm column scale ----
    vt = vocab_ref[...]                                       # (VT, P)
    code = lax.dot_general(xn_sc[...], vt,
                           dimension_numbers=(((1,), (1,)), ((), ())),
                           preferred_element_type=jnp.float32)    # (2*bsc, VT)
    col0 = j * v_tile
    if lane_aligned:
        col0 = pl.multiple_of(col0, 128)
    code_sc[:, pl.ds(col0, v_tile)] = code * invn_ref[...]   # precomputed 1/||vocab||

    # ---- last vocab tile: collapsed sinkhorn + swapped-prediction CE ----
    @pl.when(j == pl.num_programs(1) - 1)
    def _finalize():
        klogp = klogp_ref[...]          # (1, V) = sinkhorn_iters * log(prior)
        inv_eps = 1.0 / epsilon
        inv_t = 1.0 / temperature

        def partial_ce(code_q, code_p):
            # -sum( q(code_q) * log_softmax(code_p / T) ) over this row block.
            # q = row_normalize(exp(code/eps) * prior^k): the k sinkhorn
            # iterations of the reference collapse exactly to this (the /B and
            # trailing *B cancel, and all normalizations are along vocab).
            a = code_q * inv_eps + klogp
            a = a - jnp.max(a, axis=-1, keepdims=True)
            q = jnp.exp(a)
            q = q * pl.reciprocal(jnp.sum(q, axis=-1, keepdims=True),
                                  approx=False)
            z = code_p * inv_t
            z = z - jnp.max(z, axis=-1, keepdims=True)
            lsm = z - jnp.log(jnp.sum(jnp.exp(z), axis=-1, keepdims=True))
            return -jnp.sum(q * lsm)

        total = jnp.float32(0.0)
        for r0 in range(0, bsc, row_block):     # static unroll; bounds temps
            cv = code_sc[r0:r0 + row_block, :]
            ct = code_sc[bsc + r0:bsc + r0 + row_block, :]
            total = total + partial_ce(ct, cv) + partial_ce(cv, ct)
        loss_ref[...] = jnp.zeros(loss_ref.shape, jnp.float32) + total


def vlap_forward(emb_v, emb_t, proj_w, proj_b, vocab_w, vocab_dist, *,
                 epsilon=0.05, sinkhorn_iters=3, temperature=0.1,
                 world_size=1, vocab_tile=None, batch_chunks=None):
    """emb_v: (bs, Ns, D), emb_t: (bs, P), proj_w: (P, D) torch Linear weight,
    proj_b: (P,), vocab_w: (V, P), vocab_dist: (V, 1)."""
    # TODO(synk): world_size > 1 requires the dist.all_reduce of
    # distributed_sinkhorn; only the single-device branch is implemented.
    del world_size
    assert sinkhorn_iters >= 1, "collapsed sinkhorn assumes >= 1 normalization"
    bs, ns, d = emb_v.shape
    v, p = vocab_w.shape

    # ---- vocab tile selection (bigger tiles, 128-lane aligned) ----
    if vocab_tile is None:
        if v <= 1024:
            vocab_tile = v
        else:
            vocab_tile = v   # TODO(synk): pad V to a multiple of 128 for huge,
            for cand in (1024, 512, 256, 128):   # non-aligned vocab sizes.
                if v % cand == 0:
                    vocab_tile = cand
                    break
    assert v % vocab_tile == 0
    assert vocab_tile == v or vocab_tile % 128 == 0
    nv = v // vocab_tile
    lane_aligned = (vocab_tile % 128 == 0)

    in_isz = jnp.dtype(emb_v.dtype).itemsize
    voc_isz = jnp.dtype(vocab_w.dtype).itemsize
    cd_isz = voc_isz                      # xn_sc stored in code-matmul dtype

    def est_vmem(bsc_c):
        rb = _pick_row_block(bsc_c)
        return (2 * bsc_c * ns * d * in_isz         # emb_v chunk (dbl-buffered)
                + 2 * bsc_c * d * in_isz            # emb_v mean chunk
                + 2 * bsc_c * p * in_isz            # emb_t chunk
                + 2 * p * d * in_isz + 2 * p * in_isz   # W + bias
                + 2 * vocab_tile * p * voc_isz      # vocab tile (dbl-buffered)
                + 2 * vocab_tile * 4 + v * 4        # inv norms tile + k*log(prior)
                + 2 * bsc_c * ns * p * 4            # proj output block
                + 2 * 8 * 128 * 4                   # loss output block
                + 2 * bsc_c * p * cd_isz            # xn_sc
                + 2 * bsc_c * v * 4                 # code_sc
                + 3 * rb * v * 4)                   # finalize temporaries

    vmem_cap = _vmem_capacity_bytes()
    budget = int(0.75 * vmem_cap)

    if batch_chunks is None:
        # Single pass over the vocab table whenever everything fits VMEM; more
        # chunks only shrink scratch (they re-stream the vocab table per chunk).
        # TODO(synk): on v7x prefer a multiple of 2 so the "parallel" batch
        # axis shards across both TensorCores.
        candidates = [c for c in range(1, bs + 1)
                      if bs % c == 0 and (bs // c) % 8 == 0]
        batch_chunks = None
        for c in candidates:
            if est_vmem(bs // c) <= budget:
                batch_chunks = c
                break
        if batch_chunks is None:
            batch_chunks = candidates[-1] if candidates else 1
    assert bs % batch_chunks == 0
    bsc = bs // batch_chunks
    assert bsc % 8 == 0, "per-chunk batch must be a multiple of 8 (sublane tile)"
    row_block = _pick_row_block(bsc)

    est = est_vmem(bsc)
    # Optional 3rd vocab buffer hides the finalize bubble (mainly v5e); only
    # when there are enough tiles and VMEM headroom.
    if nv >= 4 and est + vocab_tile * p * voc_isz <= budget:
        est += vocab_tile * p * voc_isz
        vocab_spec = pl.BlockSpec((vocab_tile, p), lambda i, j: (j, 0),
                                  pipeline_mode=pl.Buffered(3))
    else:
        vocab_spec = pl.BlockSpec((vocab_tile, p), lambda i, j: (j, 0))
    vmem_limit = int(max(min(int(1.3 * est), int(0.85 * vmem_cap)), 32 << 20))

    # ---- tiny wrapper precomputes (all O(V) or O(bs*D)) ----
    f32 = jnp.float32
    vw32 = vocab_w.astype(f32)
    inv_vnorm = lax.rsqrt(jnp.maximum(jnp.sum(vw32 * vw32, axis=-1), 1e-24))
    inv_vnorm = inv_vnorm.reshape(1, v)                               # (1, V) f32
    log_prior = jax.nn.log_softmax(vocab_dist.astype(f32).reshape(-1) * 4.0)
    klogp = (float(sinkhorn_iters) * log_prior).reshape(1, v)         # (1, V) f32

    # Free row-major reshapes only — no HBM transposes in the wrapper.
    emb_v_flat = emb_v.reshape(bs * ns, d)
    emb_v_mean = jnp.mean(emb_v.astype(f32), axis=1).astype(emb_v.dtype)  # (bs, D)
    b2d = proj_b.reshape(1, p)

    kernel = functools.partial(
        vlap_kernel, bsc=bsc, epsilon=epsilon, temperature=temperature,
        row_block=row_block, lane_aligned=lane_aligned)

    loss_parts, proj_flat = pl.pallas_call(
        kernel,
        grid=(batch_chunks, nv),
        in_specs=[
            pl.BlockSpec((bsc * ns, d), lambda i, j: (i, 0)),    # emb_v rows of chunk i
            pl.BlockSpec((bsc, d), lambda i, j: (i, 0)),         # per-sample mean of emb_v
            pl.BlockSpec((bsc, p), lambda i, j: (i, 0)),         # emb_t rows of chunk i
            pl.BlockSpec((p, d), lambda i, j: (0, 0)),           # Linear weight (resident)
            pl.BlockSpec((1, p), lambda i, j: (0, 0)),           # Linear bias (resident)
            vocab_spec,                                          # vocab tile (pipelined)
            pl.BlockSpec((1, vocab_tile), lambda i, j: (0, j)),  # 1/||vocab row|| tile
            pl.BlockSpec((1, v), lambda i, j: (0, 0)),           # k * log(prior)
        ],
        out_specs=(
            pl.BlockSpec((1, 8, 128), lambda i, j: (i, 0, 0)),   # per-chunk loss partial
            pl.BlockSpec((bsc * ns, p), lambda i, j: (i, 0)),    # projected emb_v
        ),
        out_shape=(
            jax.ShapeDtypeStruct((batch_chunks, 8, 128), jnp.float32),
            jax.ShapeDtypeStruct((bs * ns, p), jnp.float32),
        ),
        scratch_shapes=[
            pltpu.VMEM((2 * bsc, p), vocab_w.dtype),  # [l2n(v_mean); l2n(emb_t)]
            pltpu.VMEM((2 * bsc, v), jnp.float32),    # accumulated code_v / code_t
        ],
        compiler_params=pltpu.CompilerParams(
            dimension_semantics=("parallel", "arbitrary"),
            vmem_limit_bytes=vmem_limit),
    )(emb_v_flat, emb_v_mean, emb_t, proj_w, b2d, vocab_w, inv_vnorm, klogp)

    loss = jnp.sum(loss_parts[:, 0, 0]) * (0.5 / bs)
    emb_v_proj = proj_flat.reshape(bs, ns, p)        # free reshape
    return loss, emb_v_proj, emb_t


def vlap_reference(emb_v, emb_t, proj_w, proj_b, vocab_w, vocab_dist, *,
                   epsilon=0.05, sinkhorn_iters=3, temperature=0.1, world_size=1):
    """Pure-JAX mirror of the PyTorch forward, for verification."""
    def l2n(x):
        return x / jnp.maximum(
            jnp.sqrt(jnp.sum(x * x, axis=-1, keepdims=True)), 1e-12)

    proj = jnp.einsum('bnd,pd->bnp', emb_v, proj_w) + proj_b            # (bs,Ns,P)
    vocab_n = l2n(vocab_w)
    code_v = l2n(proj.mean(1)) @ vocab_n.T                              # (bs, V)
    code_t = l2n(emb_t) @ vocab_n.T                                     # (bs, V)
    prior = jax.nn.softmax(vocab_dist / 0.25, axis=0)                   # (V, 1)
    B = emb_v.shape[0] * world_size

    def sinkhorn(out):
        Q = jnp.exp(out / epsilon).T                                    # (V, bs)
        for _ in range(sinkhorn_iters):
            Q = Q * prior
            Q = Q / jnp.sum(Q, axis=0, keepdims=True)
            Q = Q / B
        return (Q * B).T

    q_v = sinkhorn(code_v)
    q_t = sinkhorn(code_t)
    x_v = code_v / temperature
    x_t = code_t / temperature
    subloss = (-jnp.mean(jnp.sum(q_t * jax.nn.log_softmax(x_v, axis=1), axis=1))
               - jnp.mean(jnp.sum(q_v * jax.nn.log_softmax(x_t, axis=1), axis=1)))
    return subloss / 2, proj, emb_t


if __name__ == "__main__":
    # Small shapes consistent with the module (img_dim / prefix_size style).
    bs, ns = 16, 4         # batch, visual sequence length
    d = 128                # img_dim   (module uses 768)
    p = 128                # prefix_size (module uses 768/512)
    v = 256                # vocab size

    key = jax.random.PRNGKey(0)
    k1, k2, k3, k4, k5, k6 = jax.random.split(key, 6)

    emb_v = jax.random.normal(k1, (bs, ns, d), jnp.float32)
    emb_t = jax.random.normal(k2, (bs, p), jnp.float32)
    # nn.Linear(d, p) parameters, deterministic init
    proj_w = jax.random.normal(k3, (p, d), jnp.float32) * (1.0 / d ** 0.5)
    proj_b = jax.random.normal(k4, (p,), jnp.float32) * 0.01
    # vocab embedding table + vocab prior
    vocab_w = jax.random.normal(k5, (v, p), jnp.float32)
    vocab_dist = jax.random.uniform(k6, (v, 1), jnp.float32)

    loss, emb_v_proj, emb_t_out = vlap_forward(
        emb_v, emb_t, proj_w, proj_b, vocab_w, vocab_dist)
    jax.block_until_ready((loss, emb_v_proj, emb_t_out))

    ref_loss, ref_proj, _ = vlap_reference(
        emb_v, emb_t, proj_w, proj_b, vocab_w, vocab_dist)

    assert bool(jnp.allclose(loss, ref_loss, rtol=2e-3, atol=2e-3)), (
        float(loss), float(ref_loss))
    assert bool(jnp.allclose(emb_v_proj, ref_proj, rtol=2e-3, atol=2e-3))
    print("KERNEL_OK")
</pallas_src>

<mosaic_0001>
module attributes {stable_mosaic.version = 11 : i64} {
  func.func @vlap_kernel(%arg0: i32, %arg1: i32, %arg2: memref<64x128xf32, #tpu.memory_space<vmem>>, %arg3: memref<16x128xf32, #tpu.memory_space<vmem>>, %arg4: memref<16x128xf32, #tpu.memory_space<vmem>>, %arg5: memref<128x128xf32, #tpu.memory_space<vmem>>, %arg6: memref<1x128xf32, #tpu.memory_space<vmem>>, %arg7: memref<256x128xf32, #tpu.memory_space<vmem>>, %arg8: memref<1x256xf32, #tpu.memory_space<vmem>>, %arg9: memref<1x256xf32, #tpu.memory_space<vmem>>, %arg10: memref<1x8x128xf32, #tpu.memory_space<vmem>>, %arg11: memref<64x128xf32, #tpu.memory_space<vmem>>, %arg12: memref<32x128xf32, #tpu.memory_space<vmem>>, %arg13: memref<32x256xf32, #tpu.memory_space<vmem>>) attributes {dimension_semantics = [#tpu.dimension_semantics<parallel>, #tpu.dimension_semantics<arbitrary>], iteration_bounds = array<i64: 1, 1>, scalar_prefetch = 0 : i64, scratch_operands = 2 : i64, tpu.core_type = #tpu.core_type<tc>, window_params = [{transform_indices = @transform_0, window_bounds = array<i64: 64, 128>}, {transform_indices = @transform_1, window_bounds = array<i64: 16, 128>}, {transform_indices = @transform_2, window_bounds = array<i64: 16, 128>}, {pipeline_mode = #tpu.pipeline_mode<synchronous>, transform_indices = @transform_3, window_bounds = array<i64: 128, 128>}, {pipeline_mode = #tpu.pipeline_mode<synchronous>, transform_indices = @transform_4, window_bounds = array<i64: 1, 128>}, {transform_indices = @transform_5, window_bounds = array<i64: 256, 128>}, {transform_indices = @transform_6, window_bounds = array<i64: 1, 256>}, {pipeline_mode = #tpu.pipeline_mode<synchronous>, transform_indices = @transform_7, window_bounds = array<i64: 1, 256>}, {transform_indices = @transform_8, window_bounds = array<i64: 1, 8, 128>}, {transform_indices = @transform_9, window_bounds = array<i64: 64, 128>}]} {
    %c0_i32 = arith.constant 0 : i32
    %0 = arith.cmpi eq, %arg1, %c0_i32 : i32
    %1 = arith.extui %0 : i1 to i32
    %c0_i32_0 = arith.constant 0 : i32
    %2 = arith.cmpi ne, %1, %c0_i32_0 : i32
    scf.if %2 {
      %c0_9 = arith.constant 0 : index
      %c0_10 = arith.constant 0 : index
      %16 = vector.load %arg5[%c0_9, %c0_10] : memref<128x128xf32, #tpu.memory_space<vmem>>, vector<128x128xf32>
      %c0_11 = arith.constant 0 : index
      %c0_12 = arith.constant 0 : index
      %17 = vector.load %arg6[%c0_11, %c0_12] : memref<1x128xf32, #tpu.memory_space<vmem>>, vector<1x128xf32>
      %c0_13 = arith.constant 0 : index
      %c0_14 = arith.constant 0 : index
      %18 = vector.load %arg2[%c0_13, %c0_14] : memref<64x128xf32, #tpu.memory_space<vmem>>, vector<64x128xf32>
      %cst_15 = arith.constant dense<0.000000e+00> : vector<64x128xf32>
      %19 = tpu.matmul %18, %16, %cst_15 {dimension_numbers = #tpu.dot_dimension_numbers<[1], [1], [0], [0], [0, 0, 1, 0], [], []>} : vector<64x128xf32>, vector<128x128xf32>, vector<64x128xf32> -> vector<64x128xf32>
      %20 = vector.broadcast %17 : vector<1x128xf32> to vector<64x128xf32>
      %21 = arith.addf %19, %20 : vector<64x128xf32>
      %c0_16 = arith.constant 0 : index
      %c0_17 = arith.constant 0 : index
      %22 = vector.load %arg11[%c0_16, %c0_17] : memref<64x128xf32, #tpu.memory_space<vmem>>, vector<64x128xf32>
      tpu.vector_store %arg11[%c0_16, %c0_17], %21 {strides = array<i32>} : memref<64x128xf32, #tpu.memory_space<vmem>>, vector<64x128xf32>,
      %c0_18 = arith.constant 0 : index
      %c0_19 = arith.constant 0 : index
      %23 = vector.load %arg3[%c0_18, %c0_19] : memref<16x128xf32, #tpu.memory_space<vmem>>, vector<16x128xf32>
      %cst_20 = arith.constant dense<0.000000e+00> : vector<16x128xf32>
      %24 = tpu.matmul %23, %16, %cst_20 {dimension_numbers = #tpu.dot_dimension_numbers<[1], [1], [0], [0], [0, 0, 1, 0], [], []>} : vector<16x128xf32>, vector<128x128xf32>, vector<16x128xf32> -> vector<16x128xf32>
      %25 = vector.broadcast %17 : vector<1x128xf32> to vector<16x128xf32>
      %26 = arith.addf %24, %25 : vector<16x128xf32>
      %27 = arith.mulf %26, %26 : vector<16x128xf32>
      %cst_21 = arith.constant dense<0.000000e+00> : vector<16xf32>
      %28 = vector.multi_reduction <add>, %27, %cst_21 [1] : vector<16x128xf32> to vector<16xf32>
      %29 = vector.shape_cast %28 : vector<16xf32> to vector<16x1xf32>
      %cst_22 = arith.constant 1.000000e-24 : f32
      %30 = vector.broadcast %cst_22 : f32 to vector<16x1xf32>
      %31 = arith.maximumf %29, %30 : vector<16x1xf32>
      %32 = math.rsqrt %31 : vector<16x1xf32>
      %33 = vector.broadcast %32 : vector<16x1xf32> to vector<16x128xf32>
      %34 = arith.mulf %26, %33 : vector<16x128xf32>
      %c0_23 = arith.constant 0 : index
      %c0_24 = arith.constant 0 : index
      %35 = vector.load %arg12[%c0_23, %c0_24] : memref<32x128xf32, #tpu.memory_space<vmem>>, vector<16x128xf32>
      tpu.vector_store %arg12[%c0_23, %c0_24], %34 {strides = array<i32>} : memref<32x128xf32, #tpu.memory_space<vmem>>, vector<16x128xf32>,
      %c0_25 = arith.constant 0 : index
      %c0_26 = arith.constant 0 : index
      %36 = vector.load %arg4[%c0_25, %c0_26] : memref<16x128xf32, #tpu.memory_space<vmem>>, vector<16x128xf32>
      %37 = arith.mulf %36, %36 : vector<16x128xf32>
      %cst_27 = arith.constant dense<0.000000e+00> : vector<16xf32>
      %38 = vector.multi_reduction <add>, %37, %cst_27 [1] : vector<16x128xf32> to vector<16xf32>
      %39 = vector.shape_cast %38 : vector<16xf32> to vector<16x1xf32>
      %cst_28 = arith.constant 1.000000e-24 : f32
      %40 = vector.broadcast %cst_28 : f32 to vector<16x1xf32>
      %41 = arith.maximumf %39, %40 : vector<16x1xf32>
      %42 = math.rsqrt %41 : vector<16x1xf32>
      %43 = vector.broadcast %42 : vector<16x1xf32> to vector<16x128xf32>
      %44 = arith.mulf %36, %43 : vector<16x128xf32>
      %c16 = arith.constant 16 : index
      %c0_29 = arith.constant 0 : index
      %45 = vector.load %arg12[%c16, %c0_29] : memref<32x128xf32, #tpu.memory_space<vmem>>, vector<16x128xf32>
      tpu.vector_store %arg12[%c16, %c0_29], %44 {strides = array<i32>} : memref<32x128xf32, #tpu.memory_space<vmem>>, vector<16x128xf32>,
    } else {
    }
    %c0 = arith.constant 0 : index
    %c0_1 = arith.constant 0 : index
    %3 = vector.load %arg7[%c0, %c0_1] : memref<256x128xf32, #tpu.memory_space<vmem>>, vector<256x128xf32>
    %c0_2 = arith.constant 0 : index
    %c0_3 = arith.constant 0 : index
    %4 = vector.load %arg12[%c0_2, %c0_3] : memref<32x128xf32, #tpu.memory_space<vmem>>, vector<32x128xf32>
    %cst = arith.constant dense<0.000000e+00> : vector<32x256xf32>
    %5 = tpu.matmul %4, %3, %cst {dimension_numbers = #tpu.dot_dimension_numbers<[1], [1], [0], [0], [0, 0, 1, 0], [], []>} : vector<32x128xf32>, vector<256x128xf32>, vector<32x256xf32> -> vector<32x256xf32>
    %c256_i32 = arith.constant 256 : i32
    %6 = arith.muli %arg1, %c256_i32 : i32
    %7 = tpu.assume_multiple %6, 128 : i32
    %c0_4 = arith.constant 0 : index
    %c0_5 = arith.constant 0 : index
    %8 = vector.load %arg8[%c0_4, %c0_5] : memref<1x256xf32, #tpu.memory_space<vmem>>, vector<1x256xf32>
    %9 = vector.broadcast %8 : vector<1x256xf32> to vector<32x256xf32>
    %10 = arith.mulf %5, %9 : vector<32x256xf32>
    %c0_6 = arith.constant 0 : index
    %11 = arith.index_cast %7 : i32 to index
    %12 = vector.load %arg13[%c0_6, %11] : memref<32x256xf32, #tpu.memory_space<vmem>>, vector<32x256xf32>
    tpu.vector_store %arg13[%c0_6, %11], %10 {strides = array<i32>} : memref<32x256xf32, #tpu.memory_space<vmem>>, vector<32x256xf32>,
    %c0_i32_7 = arith.constant 0 : i32
    %13 = arith.cmpi eq, %arg1, %c0_i32_7 : i32
    %14 = arith.extui %13 : i1 to i32
    %c0_i32_8 = arith.constant 0 : i32
    %15 = arith.cmpi ne, %14, %c0_i32_8 : i32
    scf.if %15 {
      %c0_9 = arith.constant 0 : index
      %c0_10 = arith.constant 0 : index
      %16 = vector.load %arg9[%c0_9, %c0_10] : memref<1x256xf32, #tpu.memory_space<vmem>>, vector<1x256xf32>
      %c0_11 = arith.constant 0 : index
      %c0_12 = arith.constant 0 : index
      %17 = vector.load %arg13[%c0_11, %c0_12] : memref<32x256xf32, #tpu.memory_space<vmem>>, vector<16x256xf32>
      %c16 = arith.constant 16 : index
      %c0_13 = arith.constant 0 : index
      %18 = vector.load %arg13[%c16, %c0_13] : memref<32x256xf32, #tpu.memory_space<vmem>>, vector<16x256xf32>
      %cst_14 = arith.constant 2.000000e+01 : f32
      %19 = vector.broadcast %cst_14 : f32 to vector<16x256xf32>
      %20 = arith.mulf %18, %19 : vector<16x256xf32>
      %21 = vector.broadcast %16 : vector<1x256xf32> to vector<16x256xf32>
      %22 = arith.addf %20, %21 : vector<16x256xf32>
      %cst_15 = arith.constant dense<0xFF800000> : vector<16xf32>
      %23 = vector.multi_reduction <maximumf>, %22, %cst_15 [1] : vector<16x256xf32> to vector<16xf32>
      %24 = vector.shape_cast %23 : vector<16xf32> to vector<16x1xf32>
      %25 = vector.broadcast %24 : vector<16x1xf32> to vector<16x256xf32>
      %26 = arith.subf %22, %25 : vector<16x256xf32>
      %27 = math.exp %26 : vector<16x256xf32>
      %cst_16 = arith.constant dense<0.000000e+00> : vector<16xf32>
      %28 = vector.multi_reduction <add>, %27, %cst_16 [1] : vector<16x256xf32> to vector<16xf32>
      %29 = vector.shape_cast %28 : vector<16xf32> to vector<16x1xf32>
      %30 = tpu.reciprocal %29 : vector<16x1xf32> -> vector<16x1xf32>
      %31 = vector.broadcast %30 : vector<16x1xf32> to vector<16x256xf32>
      %32 = arith.mulf %27, %31 : vector<16x256xf32>
      %cst_17 = arith.constant 1.000000e+01 : f32
      %33 = vector.broadcast %cst_17 : f32 to vector<16x256xf32>
      %34 = arith.mulf %17, %33 : vector<16x256xf32>
      %cst_18 = arith.constant dense<0xFF800000> : vector<16xf32>
      %35 = vector.multi_reduction <maximumf>, %34, %cst_18 [1] : vector<16x256xf32> to vector<16xf32>
      %36 = vector.shape_cast %35 : vector<16xf32> to vector<16x1xf32>
      %37 = vector.broadcast %36 : vector<16x1xf32> to vector<16x256xf32>
      %38 = arith.subf %34, %37 : vector<16x256xf32>
      %39 = math.exp %38 : vector<16x256xf32>
      %cst_19 = arith.constant dense<0.000000e+00> : vector<16xf32>
      %40 = vector.multi_reduction <add>, %39, %cst_19 [1] : vector<16x256xf32> to vector<16xf32>
      %41 = vector.shape_cast %40 : vector<16xf32> to vector<16x1xf32>
      %42 = math.log %41 : vector<16x1xf32>
      %43 = vector.broadcast %42 : vector<16x1xf32> to vector<16x256xf32>
      %44 = arith.subf %38, %43 : vector<16x256xf32>
      %45 = arith.mulf %32, %44 : vector<16x256xf32>
      %46 = vector.shape_cast %45 : vector<16x256xf32> to vector<1x16x256xf32>
      %cst_20 = arith.constant dense<0.000000e+00> : vector<1xf32>
      %47 = vector.multi_reduction <add>, %46, %cst_20 [1, 2] : vector<1x16x256xf32> to vector<1xf32>
      %48 = vector.shape_cast %47 : vector<1xf32> to vector<1x1x1xf32>
      %49 = vector.extract %48[0, 0, 0] : f32 from vector<1x1x1xf32>
      %cst_21 = arith.constant 0.000000e+00 : f32
      %50 = arith.subf %cst_21, %49 : f32
      %cst_22 = arith.constant 0.000000e+00 : f32
      %51 = arith.addf %cst_22, %50 : f32
      %cst_23 = arith.constant 2.000000e+01 : f32
      %52 = vector.broadcast %cst_23 : f32 to vector<16x256xf32>
      %53 = arith.mulf %17, %52 : vector<16x256xf32>
      %54 = vector.broadcast %16 : vector<1x256xf32> to vector<16x256xf32>
      %55 = arith.addf %53, %54 : vector<16x256xf32>
      %cst_24 = arith.constant dense<0xFF800000> : vector<16xf32>
      %56 = vector.multi_reduction <maximumf>, %55, %cst_24 [1] : vector<16x256xf32> to vector<16xf32>
      %57 = vector.shape_cast %56 : vector<16xf32> to vector<16x1xf32>
      %58 = vector.broadcast %57 : vector<16x1xf32> to vector<16x256xf32>
      %59 = arith.subf %55, %58 : vector<16x256xf32>
      %60 = math.exp %59 : vector<16x256xf32>
      %cst_25 = arith.constant dense<0.000000e+00> : vector<16xf32>
      %61 = vector.multi_reduction <add>, %60, %cst_25 [1] : vector<16x256xf32> to vector<16xf32>
      %62 = vector.shape_cast %61 : vector<16xf32> to vector<16x1xf32>
      %63 = tpu.reciprocal %62 : vector<16x1xf32> -> vector<16x1xf32>
      %64 = vector.broadcast %63 : vector<16x1xf32> to vector<16x256xf32>
      %65 = arith.mulf %60, %64 : vector<16x256xf32>
      %cst_26 = arith.constant 1.000000e+01 : f32
      %66 = vector.broadcast %cst_26 : f32 to vector<16x256xf32>
      %67 = arith.mulf %18, %66 : vector<16x256xf32>
      %cst_27 = arith.constant dense<0xFF800000> : vector<16xf32>
      %68 = vector.multi_reduction <maximumf>, %67, %cst_27 [1] : vector<16x256xf32> to vector<16xf32>
      %69 = vector.shape_cast %68 : vector<16xf32> to vector<16x1xf32>
      %70 = vector.broadcast %69 : vector<16x1xf32> to vector<16x256xf32>
      %71 = arith.subf %67, %70 : vector<16x256xf32>
      %72 = math.exp %71 : vector<16x256xf32>
      %cst_28 = arith.constant dense<0.000000e+00> : vector<16xf32>
      %73 = vector.multi_reduction <add>, %72, %cst_28 [1] : vector<16x256xf32> to vector<16xf32>
      %74 = vector.shape_cast %73 : vector<16xf32> to vector<16x1xf32>
      %75 = math.log %74 : vector<16x1xf32>
      %76 = vector.broadcast %75 : vector<16x1xf32> to vector<16x256xf32>
      %77 = arith.subf %71, %76 : vector<16x256xf32>
      %78 = arith.mulf %65, %77 : vector<16x256xf32>
      %79 = vector.shape_cast %78 : vector<16x256xf32> to vector<1x16x256xf32>
      %cst_29 = arith.constant dense<0.000000e+00> : vector<1xf32>
      %80 = vector.multi_reduction <add>, %79, %cst_29 [1, 2] : vector<1x16x256xf32> to vector<1xf32>
      %81 = vector.shape_cast %80 : vector<1xf32> to vector<1x1x1xf32>
      %82 = vector.extract %81[0, 0, 0] : f32 from vector<1x1x1xf32>
      %cst_30 = arith.constant 0.000000e+00 : f32
      %83 = arith.subf %cst_30, %82 : f32
      %84 = arith.addf %51, %83 : f32
      %cst_31 = arith.constant 0.000000e+00 : f32
      %85 = vector.broadcast %cst_31 : f32 to vector<1x8x128xf32>
      %86 = vector.broadcast %84 : f32 to vector<1x8x128xf32>
      %87 = arith.addf %85, %86 : vector<1x8x128xf32>
      %c0_32 = arith.constant 0 : index
      %c0_33 = arith.constant 0 : index
      %c0_34 = arith.constant 0 : index
      %88 = vector.load %arg10[%c0_32, %c0_33, %c0_34] : memref<1x8x128xf32, #tpu.memory_space<vmem>>, vector<1x8x128xf32>
      tpu.vector_store %arg10[%c0_32, %c0_33, %c0_34], %87 {strides = array<i32>} : memref<1x8x128xf32, #tpu.memory_space<vmem>>, vector<1x8x128xf32>,
    } else {
    }
    return
  }
  func.func @transform_0(%arg0: i32, %arg1: i32) -> (i32, i32) {
    %c0_i32 = arith.constant 0 : i32
    %c0_i32_0 = arith.constant 0 : i32
    return %arg0, %c0_i32 : i32, i32
  }
  func.func @transform_1(%arg0: i32, %arg1: i32) -> (i32, i32) {
    %c0_i32 = arith.constant 0 : i32
    %c0_i32_0 = arith.constant 0 : i32
    return %arg0, %c0_i32 : i32, i32
  }
  func.func @transform_2(%arg0: i32, %arg1: i32) -> (i32, i32) {
    %c0_i32 = arith.constant 0 : i32
    %c0_i32_0 = arith.constant 0 : i32
    return %arg0, %c0_i32 : i32, i32
  }
  func.func @transform_3(%arg0: i32, %arg1: i32) -> (i32, i32) {
    %c0_i32 = arith.constant 0 : i32
    %c0_i32_0 = arith.constant 0 : i32
    %c0_i32_1 = arith.constant 0 : i32
    return %c0_i32, %c0_i32_0 : i32, i32
  }
  func.func @transform_4(%arg0: i32, %arg1: i32) -> (i32, i32) {
    %c0_i32 = arith.constant 0 : i32
    %c0_i32_0 = arith.constant 0 : i32
    %c0_i32_1 = arith.constant 0 : i32
    return %c0_i32, %c0_i32_0 : i32, i32
  }
  func.func @transform_5(%arg0: i32, %arg1: i32) -> (i32, i32) {
    %c0_i32 = arith.constant 0 : i32
    %c0_i32_0 = arith.constant 0 : i32
    return %arg1, %c0_i32 : i32, i32
  }
  func.func @transform_6(%arg0: i32, %arg1: i32) -> (i32, i32) {
    %c0_i32 = arith.constant 0 : i32
    %c0_i32_0 = arith.constant 0 : i32
    return %c0_i32, %arg1 : i32, i32
  }
  func.func @transform_7(%arg0: i32, %arg1: i32) -> (i32, i32) {
    %c0_i32 = arith.constant 0 : i32
    %c0_i32_0 = arith.constant 0 : i32
    %c0_i32_1 = arith.constant 0 : i32
    return %c0_i32, %c0_i32_0 : i32, i32
  }
  func.func @transform_8(%arg0: i32, %arg1: i32) -> (i32, i32, i32) {
    %c0_i32 = arith.constant 0 : i32
    %c0_i32_0 = arith.constant 0 : i32
    %c0_i32_1 = arith.constant 0 : i32
    return %arg0, %c0_i32, %c0_i32_0 : i32, i32, i32
  }
  func.func @transform_9(%arg0: i32, %arg1: i32) -> (i32, i32) {
    %c0_i32 = arith.constant 0 : i32
    %c0_i32_0 = arith.constant 0 : i32
    return %arg0, %c0_i32 : i32, i32
  }
}

</mosaic_0001>

<bundles_post_ra>
// kernel: tpu_custom_call.1
= control target key start
LH: loop header
LB: loop body
LE: loop exit
PB: predicated region body
PF: predicated region fallthrough
CT: control target
= control target key end

     0   :  { %15 = vsyncpa [#allocation5], 0  ;;  %s1289_s0 = inlined_call_operand.hbm [shape: f32[64,128], index: 0, kind: input, shape index: {}]   ;;  %s1290_s1 = inlined_call_operand.hbm [shape: f32[16,128], index: 1, kind: input, shape index: {}]   ;;  %s1291_s2 = inlined_call_operand.hbm [shape: f32[16,128], index: 2, kind: input, shape index: {}]   ;;  %s1292_s3 = inlined_call_operand.hbm [shape: f32[128,128], index: 3, kind: input, shape index: {}]   ;;  %s1293_s4 = inlined_call_operand.vmem [shape: f32[1,128], index: 4, kind: input, shape index: {}]   ;;  %s1294_s5 = inlined_call_operand.hbm [shape: f32[256,128], index: 5, kind: input, shape index: {}]   ;;  %s1295_s6 = inlined_call_operand.vmem [shape: f32[1,256], index: 6, kind: input, shape index: {}]   ;;  %s1296_s7 = inlined_call_operand.vmem [shape: f32[1,256], index: 7, kind: input, shape index: {}]   ;;  %s1297_s8 = inlined_call_operand.hbm [shape: f32[1,8,128], index: 8, kind: output, shape index: {0}]   ;;  %s1298_s9 = inlined_call_operand.hbm [shape: f32[64,128], index: 9, kind: output, shape index: {1}]  }
   0x1   :  { %16 = vsyncpa [#allocation8], 0 }
   0x2   :  { %17 = vsyncpa [#allocation11], 0 }
   0x3   :  { %18 = vsyncpa [#allocation6], 0 }
   0x4   :  { %19 = vsyncpa [#allocation15], 0  ;;  %s1140_s30 = smov [#allocation7]   ;;  %s1141_s11 = smov [#allocation10]  }
   0x5   :  { %s37_s10 = sshll.u32 %s1140_s30, 4  ;;  %s61_s12 = sshll.u32 %s1141_s11, 4  ;;  %s38_s10 = int_to_ptr.vmem [resolvable:$true] %s37_s10  ;;  %s62_s12 = int_to_ptr.vmem [resolvable:$true] %s61_s12 }
   0x6   :  { %s998_s13 = scalar_lea.vmem %s38_s10, 256  ;;  %p1003_p1 = scmp.lt.s32.totalorder %s38_s10, %s38_s10 }
   0x7   :  { %p999_p0 = scmp.ne.s32.totalorder %s38_s10, %s998_s13  ;;  %p1004_p2 = scmp.lt.s32.totalorder %s998_s13, %s998_s13 }
   0x9   :  { %p1005_p3 = por %p1004_p2, %p1003_p1 }
   0xb   :  { %p1006_p4 = pnand %p1005_p3, %p999_p0 }
   0xd   :  { %1009 = shalt.err (!%p1006_p4)
}
   0xe   :  { %s1142_s14 = smov 128   ;;  %s1143_s15 = smov 8  }
   0xf   :  { %43 = dma.hbm_to_vmem [thread:$0]  %s1290_s1, 256, %s38_s10, [#allocation8], %s1142_s14, %s1142_s14, %s1143_s15  }
  0x10   :  { %s1018_s18 = scalar_lea.vmem %s62_s12, 2048  ;;  %p1023_p6 = scmp.lt.s32.totalorder %s62_s12, %s62_s12 }
  0x11   :  { %p1019_p5 = scmp.ne.s32.totalorder %s62_s12, %s1018_s18  ;;  %p1024_p7 = scmp.lt.s32.totalorder %s1018_s18, %s1018_s18 }
  0x13   :  { %p1025_p8 = por %p1024_p7, %p1023_p6 }
  0x15   :  { %p1026_p9 = pnand %p1025_p8, %p1019_p5 }
  0x17   :  { %1029 = shalt.err (!%p1026_p9)
}
  0x18   :  { %67 = dma.hbm_to_vmem [thread:$0]  %s1292_s3, 2048, %s62_s12, [#allocation11], %s1142_s14, %s1142_s14, %s1143_s15  }
  0x19   :  { %s1144_s21 = smov [#allocation4]   ;;  %s1145_s23 = smov [#allocation9]  }
  0x1a   :  { %s25_s22 = sshll.u32 %s1144_s21, 4  ;;  %s49_s24 = sshll.u32 %s1145_s23, 4  ;;  %s26_s22 = int_to_ptr.vmem [resolvable:$true] %s25_s22  ;;  %s50_s24 = int_to_ptr.vmem [resolvable:$true] %s49_s24 }
  0x1b   :  { %s1038_s1 = scalar_lea.vmem %s26_s22, 1024  ;;  %p1043_p11 = scmp.lt.s32.totalorder %s26_s22, %s26_s22 }
  0x1c   :  { %p1039_p10 = scmp.ne.s32.totalorder %s26_s22, %s1038_s1  ;;  %p1044_p12 = scmp.lt.s32.totalorder %s1038_s1, %s1038_s1 }
  0x1e   :  { %p1045_p13 = por %p1044_p12, %p1043_p11 }
  0x20   :  { %p1046_p0 = pnand %p1045_p13, %p1039_p10 }
  0x22   :  { %1049 = shalt.err (!%p1046_p0)
}
  0x23   :  { %31 = dma.hbm_to_vmem [thread:$0]  %s1289_s0, 1024, %s26_s22, [#allocation5], %s1142_s14, %s1142_s14, %s1143_s15  }
  0x24   :  { %s1058_s3 = scalar_lea.vmem %s50_s24, 256  ;;  %p1063_p2 = scmp.lt.s32.totalorder %s50_s24, %s50_s24 }
  0x25   :  { %p1059_p1 = scmp.ne.s32.totalorder %s50_s24, %s1058_s3  ;;  %p1064_p3 = scmp.lt.s32.totalorder %s1058_s3, %s1058_s3 }
  0x27   :  { %p1065_p4 = por %p1064_p3, %p1063_p2 }
  0x29   :  { %p1066_p5 = pnand %p1065_p4, %p1059_p1 }
  0x2b   :  { %1069 = shalt.err (!%p1066_p5)
}
  0x2c   :  { %55 = dma.hbm_to_vmem [thread:$0]  %s1291_s2, 256, %s50_s24, [#allocation8], %s1142_s14, %s1142_s14, %s1143_s15  }
  0x2d   :  { %s1146_s29 = smov [#allocation12]  }
  0x2e   :  { %s75_s30 = sshll.u32 %s1146_s29, 4  ;;  %s76_s30 = int_to_ptr.vmem [resolvable:$true] %s75_s30 }
  0x2f   :  { %s1078_s10 = scalar_lea.vmem %s76_s30, 4096  ;;  %p1083_p7 = scmp.lt.s32.totalorder %s76_s30, %s76_s30 }
  0x30   :  { %p1079_p6 = scmp.ne.s32.totalorder %s76_s30, %s1078_s10  ;;  %p1084_p8 = scmp.lt.s32.totalorder %s1078_s10, %s1078_s10 }
  0x32   :  { %p1085_p9 = por %p1084_p8, %p1083_p7 }
  0x34   :  { %p1086_p10 = pnand %p1085_p9, %p1079_p6 }
  0x36   :  { %1089 = shalt.err (!%p1086_p10)
}
  0x37   :  { %81 = dma.hbm_to_vmem [thread:$0]  %s1294_s5, 4096, %s76_s30, [#allocation11], %s1142_s14, %s1142_s14, %s1143_s15  }
  0x38   :  { %1130 = dma.done.wait [#allocation5], 1024  }
  0x39   :  { %1131 = vsyncadd [#allocation5], 4294966272 }
  0x3a   :  { %1132 = dma.done.wait [#allocation8], 512  }
  0x3b   :  { %1133 = vsyncadd [#allocation8], 4294966784 }
  0x3c   :  { %1134 = dma.done.wait [#allocation11], 6144  }
  0x3d   :  { %1135 = vsyncadd [#allocation11], 4294961152  ;;  %v120_v0 = vld [vmem:[#allocation10 + $0x78] sm:$0xff]  ;;  %v119_v1 = vld [vmem:[#allocation10 + $0x70] sm:$0xff] }
  0x3e   :  { %842 = vmatprep.subr.mxu1 %v120_v0  ;;  %v118_v2 = vld [vmem:[#allocation10 + $0x68] sm:$0xff]  ;;  %v122_v3 = vld [vmem:[#allocation4] sm:$0xff]  ;;  %v116_v5 = vld [vmem:[#allocation10 + $0x58] sm:$0xff] }
  0x3f   :  { %843 = vmatpush3.xpose.msra.mxu1 %v120_v0  ;;  %874 = vmatprep.mubr.f32.mxu1 %v122_v3  ;;  %v117_v4 = vld [vmem:[#allocation10 + $0x60] sm:$0xff]  ;;  %v115_v6 = vld [vmem:[#allocation10 + $0x50] sm:$0xff]  ;;  %v114_v7 = vld [vmem:[#allocation10 + $0x48] sm:$0xff] }
  0x40   :  { %844 = vmatprep.subr.mxu1 %v119_v1  ;;  %v113_v8 = vld [vmem:[#allocation10 + $0x40] sm:$0xff]  ;;  %v112_v9 = vld [vmem:[#allocation10 + $0x38] sm:$0xff]  ;;  %v111_v10 = vld [vmem:[#allocation10 + $0x30] sm:$0xff] }
  0x41   :  { %v110_v11 = vld [vmem:[#allocation10 + $0x28] sm:$0xff]  ;;  %v109_v12 = vld [vmem:[#allocation10 + $0x20] sm:$0xff]  ;;  %v108_v13 = vld [vmem:[#allocation10 + $0x18] sm:$0xff] }
  0x42   :  { %v107_v14 = vld [vmem:[#allocation10 + $0x10] sm:$0xff]  ;;  %v106_v15 = vld [vmem:[#allocation10 + $0x8] sm:$0xff]  ;;  %v105_v16 = vld [vmem:[#allocation10] sm:$0xff] }
  0x43   :  { %845 = vmatpush3.xpose.msra.mxu1 %v119_v1  ;;  %v123_v17 = vld [vmem:[#allocation4 + $0x8] sm:$0xff]  ;;  %v124_v18 = vld [vmem:[#allocation4 + $0x10] sm:$0xff]  ;;  %v125_v19 = vld [vmem:[#allocation4 + $0x18] sm:$0xff] }
  0x44   :  { %846 = vmatprep.subr.mxu1 %v118_v2  ;;  %v126_v20 = vld [vmem:[#allocation4 + $0x20] sm:$0xff]  ;;  %v127_v21 = vld [vmem:[#allocation4 + $0x28] sm:$0xff]  ;;  %v128_v22 = vld [vmem:[#allocation4 + $0x30] sm:$0xff] }
  0x45   :  { %v129_v23 = vld [vmem:[#allocation4 + $0x38] sm:$0xff]  ;;  %v249_v24 = vld [vmem:[#allocation7] sm:$0xff]  ;;  %v250_v25 = vld [vmem:[#allocation7 + $0x8] sm:$0xff] }
  0x46   :  { %v1229_v26 = vld [vmem:[#allocation9] sm:$0xff]  ;;  %v1231_v27 = vld [vmem:[#allocation9 + $0x8] sm:$0xff]  ;;  %v385_v34 = vld [vmem:[#allocation12 + $0xe8] sm:$0xff] }
  0x47   :  { %847 = vmatpush3.xpose.msra.mxu1 %v118_v2  ;;  %v387_v28 = vld [vmem:[#allocation12 + $0xf8] sm:$0xff]  ;;  %v342_v29 = vmul.f32 %v1229_v26, %v1229_v26  ;;  %v386_v31 = vld [vmem:[#allocation12 + $0xf0] sm:$0xff]  ;;  %v343_v32 = vmul.f32 %v1231_v27, %v1231_v27  ;;  %v369_v35 = vld [vmem:[#allocation12 + $0x68] sm:$0xff] }
  0x48   :  { %848 = vmatprep.subr.mxu1 %v117_v4  ;;  %802 = vmatprep.subr.mxu0 %v387_v28  ;;  %v371_v30 = vld [vmem:[#allocation12 + $0x78] sm:$0xff]  ;;  %v370_v33 = vld [vmem:[#allocation12 + $0x70] sm:$0xff]  ;;  %v384_v36 = vld [vmem:[#allocation12 + $0xe0] sm:$0xff] }
  0x49   :  { %803 = vmatpush3.xpose.msra.mxu0 %v371_v30  ;;  %344 = vadd.xlane.f32.xlu1 %v342_v29  ;;  %v368_v37 = vld [vmem:[#allocation12 + $0x60] sm:$0xff]  ;;  %v383_v38 = vld [vmem:[#allocation12 + $0xd8] sm:$0xff]  ;;  %v382_v40 = vld [vmem:[#allocation12 + $0xd0] sm:$0xff] }
  0x4a   :  { %804 = vmatprep.subr.mxu0 %v386_v31  ;;  %v367_v39 = vld [vmem:[#allocation12 + $0x58] sm:$0xff]  ;;  %v366_v41 = vld [vmem:[#allocation12 + $0x50] sm:$0xff]  ;;  %v381_v42 = vld [vmem:[#allocation12 + $0xc8] sm:$0xff] }
  0x4b   :  { %849 = vmatpush3.xpose.msra.mxu1 %v117_v4  ;;  %v365_v43 = vld [vmem:[#allocation12 + $0x48] sm:$0xff]  ;;  %v380_v44 = vld [vmem:[#allocation12 + $0xc0] sm:$0xff]  ;;  %v379_v46 = vld [vmem:[#allocation12 + $0xb8] sm:$0xff] }
  0x4c   :  { %850 = vmatprep.subr.mxu1 %v116_v5  ;;  %v364_v45 = vld [vmem:[#allocation12 + $0x40] sm:$0xff]  ;;  %v363_v47 = vld [vmem:[#allocation12 + $0x38] sm:$0xff]  ;;  %v378_v48 = vld [vmem:[#allocation12 + $0xb0] sm:$0xff] }
  0x4d   :  { %805 = vmatpush3.xpose.msra.mxu0 %v370_v33  ;;  %346 = vadd.xlane.f32.xlu1 %v343_v32  ;;  %v362_v49 = vld [vmem:[#allocation12 + $0x30] sm:$0xff]  ;;  %v377_v50 = vld [vmem:[#allocation12 + $0xa8] sm:$0xff]  ;;  %v376_v52 = vld [vmem:[#allocation12 + $0xa0] sm:$0xff] }
  0x4e   :  { %806 = vmatprep.subr.mxu0 %v385_v34  ;;  %v361_v51 = vld [vmem:[#allocation12 + $0x28] sm:$0xff]  ;;  %v759_v53 = vld [vmem:[%s1293_s4] ss:$0 sm:$0xff] }
  0x4f   :  { %851 = vmatpush3.xpose.msra.mxu1 %v116_v5 }
  0x50   :  { %852 = vmatprep.subr.mxu1 %v115_v6 }
  0x51   :  { %807 = vmatpush3.xpose.msra.mxu0 %v369_v35 }
  0x52   :  { %808 = vmatprep.subr.mxu0 %v384_v36 }
  0x53   :  { %853 = vmatpush3.xpose.msra.mxu1 %v115_v6 }
  0x54   :  { %854 = vmatprep.subr.mxu1 %v114_v7 }
  0x55   :  { %809 = vmatpush3.xpose.msra.mxu0 %v368_v37 }
  0x56   :  { %810 = vmatprep.subr.mxu0 %v383_v38 }
  0x57   :  { %855 = vmatpush3.xpose.msra.mxu1 %v114_v7 }
  0x58   :  { %856 = vmatprep.subr.mxu1 %v113_v8 }
  0x59   :  { %811 = vmatpush3.xpose.msra.mxu0 %v367_v39  ;;  %v484_v39 = vlaneseq }
  0x5a   :  { %812 = vmatprep.subr.mxu0 %v382_v40 }
  0x5b   :  { %857 = vmatpush3.xpose.msra.mxu1 %v113_v8  ;;  %v485_v40 = vshrl.u32 %v484_v39, 7 }
  0x5c   :  { %858 = vmatprep.subr.mxu1 %v112_v9 }
  0x5d   :  { %813 = vmatpush3.xpose.msra.mxu0 %v366_v41  ;;  %v486_v41 = vsub.s32 0, %v485_v40 }
  0x5e   :  { %814 = vmatprep.subr.mxu0 %v381_v42  ;;  %v482_v42 = vld [vmem:[%s1295_s6] sm:$0x3]  ;;  %s1147_s6 = smov [#allocation14]  }
  0x5f   :  { %859 = vmatpush3.xpose.msra.mxu1 %v112_v9 }
  0x60   :  { %860 = vmatprep.subr.mxu1 %v111_v10 }
  0x61   :  { %815 = vmatpush3.xpose.msra.mxu0 %v365_v43  ;;  %v490_v43 = vsub.s32 1, %v485_v40 }
  0x62   :  { %816 = vmatprep.subr.mxu0 %v380_v44  ;;  %v487_v44 = vrot.slane %v482_v42, %v486_v41 }
  0x63   :  { %861 = vmatpush3.xpose.msra.mxu1 %v111_v10 }
  0x64   :  { %862 = vmatprep.subr.mxu1 %v110_v11 }
  0x65   :  { %817 = vmatpush3.xpose.msra.mxu0 %v364_v45  ;;  %v491_v45 = vrot.slane %v482_v42, %v490_v43 }
  0x66   :  { %818 = vmatprep.subr.mxu0 %v379_v46 }
  0x67   :  { %863 = vmatpush3.xpose.msra.mxu1 %v110_v11 }
  0x68   :  { %864 = vmatprep.subr.mxu1 %v109_v12 }
  0x69   :  { %819 = vmatpush3.xpose.msra.mxu0 %v363_v47  ;;  %v517_v47 = vld [vmem:[%s1296_s7] sm:$0x3]  ;;  %s739_s7 = sshll.u32 %s1147_s6, 4  ;;  %s740_s7 = int_to_ptr.vmem [resolvable:$true] %s739_s7 }
  0x6a   :  { %820 = vmatprep.subr.mxu0 %v378_v48  ;;  %s1090_s17 = scalar_lea.vmem %s740_s7, 1024  ;;  %p1095_p12 = scmp.lt.s32.totalorder %s740_s7, %s740_s7 }
  0x6b   :  { %865 = vmatpush3.xpose.msra.mxu1 %v109_v12  ;;  %p1091_p11 = scmp.ne.s32.totalorder %s740_s7, %s1090_s17  ;;  %p1096_p13 = scmp.lt.s32.totalorder %s1090_s17, %s1090_s17 }
  0x6c   :  { %866 = vmatprep.subr.mxu1 %v108_v13 }
  0x6d   :  { %821 = vmatpush3.xpose.msra.mxu0 %v362_v49  ;;  %p1097_p0 = por %p1096_p13, %p1095_p12 }
  0x6e   :  { %822 = vmatprep.subr.mxu0 %v377_v50 }
  0x6f   :  { %867 = vmatpush3.xpose.msra.mxu1 %v108_v13  ;;  %p1098_p1 = pnand %p1097_p0, %p1091_p11 }
  0x70   :  { %868 = vmatprep.subr.mxu1 %v107_v14 }
  0x71   :  { %823 = vmatpush3.xpose.msra.mxu0 %v361_v51  ;;  %v534_v51 = vrot.slane %v517_v47, %v486_v41 }
  0x72   :  { %824 = vmatprep.subr.mxu0 %v376_v52  ;;  %v538_v52 = vrot.slane %v517_v47, %v490_v43 }
  0x73   :  { %869 = vmatpush3.xpose.msra.mxu1 %v107_v14 }
  0x74   :  { %870 = vmatprep.subr.mxu1 %v106_v15 }
  0x77   :  { %871 = vmatpush3.xpose.msra.mxu1 %v106_v15 }
  0x78   :  { %872 = vmatprep.subr.mxu1 %v105_v16 }
  0x7b   :  { %873 = vmatpush3.xpose.msra.mxu1 %v105_v16 }
  0x7c   :  { %886 = vmatprep.subr.mxu1 %v120_v0 }
  0x7e   :  { %875 = vmatmul.mubr.f32.vlgmr.msra.gmra.mxu1 %v123_v17  ;;  %v373_v17 = vld [vmem:[#allocation12 + $0x88] sm:$0xff] }
  0x7f   :  { %887 = vmatpush3.xpose.msra.mxu1 %v120_v0  ;;  %877 = vmatprep.mubr.f32.mxu1 %v124_v18  ;;  %v357_v18 = vld [vmem:[#allocation12 + $0x8] sm:$0xff] }
  0x80   :  { %888 = vmatprep.subr.mxu1 %v119_v1 }
  0x82   :  { %878 = vmatmul.mubr.f32.gmra.mxu1 %v125_v19  ;;  %v372_v19 = vld [vmem:[#allocation12 + $0x80] sm:$0xff] }
  0x83   :  { %889 = vmatpush3.xpose.msra.mxu1 %v119_v1  ;;  %880 = vmatprep.mubr.f32.mxu1 %v126_v20  ;;  %v356_v20 = vld [vmem:[#allocation12] sm:$0xff] }
  0x84   :  { %890 = vmatprep.subr.mxu1 %v118_v2 }
  0x86   :  { %881 = vmatmul.mubr.f32.gmra.mxu1 %v127_v21 }
  0x87   :  { %891 = vmatpush3.xpose.msra.mxu1 %v118_v2  ;;  %883 = vmatprep.mubr.f32.mxu1 %v128_v22 }
  0x88   :  { %892 = vmatprep.subr.mxu1 %v117_v4 }
  0x8a   :  { %884 = vmatmul.mubr.f32.gmra.mxu1 %v129_v23 }
  0x8b   :  { %893 = vmatpush3.xpose.msra.mxu1 %v117_v4  ;;  %918 = vmatprep.mubr.f32.mxu1 %v249_v24 }
  0x8c   :  { %894 = vmatprep.subr.mxu1 %v116_v5 }
  0x8f   :  { %895 = vmatpush3.xpose.msra.mxu1 %v116_v5 }
  0x90   :  { %896 = vmatprep.subr.mxu1 %v115_v6 }
  0x93   :  { %897 = vmatpush3.xpose.msra.mxu1 %v115_v6 }
  0x94   :  { %898 = vmatprep.subr.mxu1 %v114_v7 }
  0x97   :  { %899 = vmatpush3.xpose.msra.mxu1 %v114_v7 }
  0x98   :  { %900 = vmatprep.subr.mxu1 %v113_v8 }
  0x9b   :  { %901 = vmatpush3.xpose.msra.mxu1 %v113_v8 }
  0x9c   :  { %902 = vmatprep.subr.mxu1 %v112_v9 }
  0x9f   :  { %903 = vmatpush3.xpose.msra.mxu1 %v112_v9 }
  0xa0   :  { %904 = vmatprep.subr.mxu1 %v111_v10 }
  0xa3   :  { %905 = vmatpush3.xpose.msra.mxu1 %v111_v10 }
  0xa4   :  { %906 = vmatprep.subr.mxu1 %v110_v11 }
  0xa7   :  { %907 = vmatpush3.xpose.msra.mxu1 %v110_v11 }
  0xa8   :  { %908 = vmatprep.subr.mxu1 %v109_v12 }
  0xab   :  { %909 = vmatpush3.xpose.msra.mxu1 %v109_v12  ;;  %v360_v12 = vld [vmem:[#allocation12 + $0x20] sm:$0xff] }
  0xac   :  { %910 = vmatprep.subr.mxu1 %v108_v13  ;;  %825 = vmatpush3.xpose.msra.mxu0 %v360_v12 }
  0xaf   :  { %911 = vmatpush3.xpose.msra.mxu1 %v108_v13  ;;  %v375_v13 = vld [vmem:[#allocation12 + $0x98] sm:$0xff] }
  0xb0   :  { %912 = vmatprep.subr.mxu1 %v107_v14  ;;  %826 = vmatprep.subr.mxu0 %v375_v13 }
  0xb3   :  { %913 = vmatpush3.xpose.msra.mxu1 %v107_v14  ;;  %v359_v14 = vld [vmem:[#allocation12 + $0x18] sm:$0xff] }
  0xb4   :  { %914 = vmatprep.subr.mxu1 %v106_v15  ;;  %827 = vmatpush3.xpose.msra.mxu0 %v359_v14 }
  0xb7   :  { %915 = vmatpush3.xpose.msra.mxu1 %v106_v15  ;;  %v374_v15 = vld [vmem:[#allocation12 + $0x90] sm:$0xff] }
  0xb8   :  { %916 = vmatprep.subr.mxu1 %v105_v16  ;;  %828 = vmatprep.subr.mxu0 %v374_v15 }
  0xbb   :  { %917 = vmatpush3.xpose.msra.mxu1 %v105_v16  ;;  %v358_v16 = vld [vmem:[#allocation12 + $0x10] sm:$0xff] }
  0xbc   :  { %829 = vmatpush3.xpose.msra.mxu0 %v358_v16 }
  0xbd   :  { %830 = vmatprep.subr.mxu0 %v373_v17 }
  0xbe   :  { %919 = vmatmul.mubr.f32.vlgmr.msra.gmra.mxu1 %v250_v25 }
  0xc0   :  { %831 = vmatpush3.xpose.msra.mxu0 %v357_v18 }
  0xc1   :  { %832 = vmatprep.subr.mxu0 %v372_v19 }
  0xc4   :  { %833 = vmatpush3.xpose.msra.mxu0 %v356_v20 }
  0xd2   :  { %v345_v21 = vpop.xlane.xlu1 %344 }
  0xd3   :  { %v348_v24 = vmax.f32 %v345_v21, 1e-24 }
  0xd6   :  { %v347_v25 = vpop.xlane.xlu1 %346 }
  0xd7   :  { %v349_v30 = vmax.f32 %v347_v25, 1e-24 }
 0x13e   :  { %v876_v54 = vpop.f32.mrf.mxu1 }
 0x13f   :  { %v208_v55 = vadd.f32 %v876_v54, %v759_v53 }
 0x140   :  { %v202_v56 = vpop.f32.mrf.mxu1 }
 0x141   :  { %242 = vst [vmem:[#allocation14 + $0x8] sm:$0xff] %v208_v55  ;;  %v203_v57 = vadd.f32 %v759_v53, %v202_v56 }
 0x142   :  { %v879_v58 = vpop.f32.mrf.mxu1 }
 0x143   :  { %241 = vst [vmem:[#allocation14] sm:$0xff] %v203_v57  ;;  %v218_v59 = vadd.f32 %v879_v58, %v759_v53 }
 0x144   :  { %v212_v60 = vpop.f32.mrf.mxu1 }
 0x145   :  { %244 = vst [vmem:[#allocation14 + $0x18] sm:$0xff] %v218_v59  ;;  %v213_v61 = vadd.f32 %v759_v53, %v212_v60 }
 0x146   :  { %v882_v62 = vpop.f32.mrf.mxu1 }
 0x147   :  { %243 = vst [vmem:[#allocation14 + $0x10] sm:$0xff] %v213_v61  ;;  %v228_v63 = vadd.f32 %v882_v62, %v759_v53 }
 0x148   :  { %v222_v0 = vpop.f32.mrf.mxu1 }
 0x149   :  { %246 = vst [vmem:[#allocation14 + $0x28] sm:$0xff] %v228_v63  ;;  %v223_v1 = vadd.f32 %v759_v53, %v222_v0 }
 0x14a   :  { %v885_v2 = vpop.f32.mrf.mxu1 }
 0x14b   :  { %245 = vst [vmem:[#allocation14 + $0x20] sm:$0xff] %v223_v1  ;;  %v238_v3 = vadd.f32 %v885_v2, %v759_v53 }
 0x14c   :  { %v232_v4 = vpop.f32.mrf.mxu1 }
 0x14d   :  { %248 = vst [vmem:[#allocation14 + $0x38] sm:$0xff] %v238_v3  ;;  %v233_v5 = vadd.f32 %v759_v53, %v232_v4 }
 0x14f   :  { %247 = vst [vmem:[#allocation14 + $0x30] sm:$0xff] %v233_v5 }
 0x17e   :  { %v920_v6 = vpop.f32.mrf.mxu1 }
 0x17f   :  { %v323_v9 = vadd.f32 %v920_v6, %v759_v53 }
 0x180   :  { %v317_v7 = vpop.f32.mrf.mxu1 }
 0x181   :  { %v318_v8 = vadd.f32 %v759_v53, %v317_v7  ;;  %v327_v11 = vmul.f32 %v323_v9, %v323_v9 }
 0x183   :  { %v326_v10 = vmul.f32 %v318_v8, %v318_v8 }
 0x185   :  { %328 = vadd.xlane.f32.xlu0 %v326_v10 }
 0x189   :  { %330 = vadd.xlane.f32.xlu0 %v327_v11 }
 0x20e   :  { %v329_v22 = vpop.xlane.xlu0 %328 }
 0x20f   :  { %v332_v23 = vmax.f32 %v329_v22, 1e-24 }
 0x211   :  { %934 = vrsqrt.f32 %v332_v23 }
 0x212   :  { %v331_v28 = vpop.xlane.xlu0 %330  ;;  %936 = vrsqrt.f32 %v348_v24 }
 0x213   :  { %v333_v29 = vmax.f32 %v331_v28, 1e-24 }
 0x215   :  { %938 = vrsqrt.f32 %v333_v29 }
 0x216   :  { %940 = vrsqrt.f32 %v349_v30 }
 0x21e   :  { %v935_v31 = vpop.eup %934 }
 0x21f   :  { %v336_v32 = vmul.f32 %v935_v31, %v318_v8  ;;  %v937_v33 = vpop.eup %936 }
 0x220   :  { %v352_v36 = vmul.f32 %v937_v33, %v1229_v26 }
 0x221   :  { %834 = vmatprep.mubr.f32.mxu0 %v336_v32 }
 0x222   :  { %v939_v34 = vpop.eup %938  ;;  %835 = vmatmul.mubr.f32.vlgmr.msra.gmra.mxu0 %v336_v32 }
 0x223   :  { %v337_v35 = vmul.f32 %v939_v34, %v323_v9  ;;  %v941_v37 = vpop.eup %940 }
 0x224   :  { %v353_v38 = vmul.f32 %v941_v37, %v1231_v27 }
 0x225   :  { %836 = vmatprep.mubr.f32.mxu0 %v337_v35 }
 0x226   :  { %837 = vmatmul.mubr.f32.gmra.mxu0 %v337_v35 }
 0x227   :  { %838 = vmatprep.mubr.f32.mxu0 %v352_v36 }
 0x22a   :  { %839 = vmatmul.mubr.f32.gmra.mxu0 %v352_v36 }
 0x22b   :  { %840 = vmatprep.mubr.f32.mxu0 %v353_v38 }
 0x22e   :  { %841 = vmatmul.mubr.f32.gmra.mxu0 %v353_v38 }
 0x2e2   :  { %v458_v26 = vpop.f32.mrf.mxu0 }
 0x2e3   :  { %v494_v46 = vmul.f32 %v487_v44, %v458_v26 }
 0x2e4   :  { %v460_v27 = vpop.f32.mrf.mxu0 }
 0x2e5   :  { %v495_v48 = vmul.f32 %v491_v45, %v460_v27  ;;  %v575_v49 = vmul.f32 10.0, %v494_v46  ;;  %v629_v53 = vmul.f32 20.0, %v494_v46 }
 0x2e6   :  { %v464_v50 = vpop.f32.mrf.mxu0 }
 0x2e7   :  { %v576_v54 = vmul.f32 10.0, %v495_v48  ;;  %v630_v55 = vmul.f32 20.0, %v495_v48  ;;  %v496_v56 = vmul.f32 %v487_v44, %v464_v50  ;;  %v633_v1 = vadd.f32 %v629_v53, %v534_v51 }
 0x2e8   :  { %v466_v57 = vpop.f32.mrf.mxu0 }
 0x2e9   :  { %v497_v58 = vmul.f32 %v491_v45, %v466_v57  ;;  %v579_v59 = vmax.f32 %v575_v49, %v576_v54  ;;  %v634_v61 = vadd.f32 %v630_v55, %v538_v52  ;;  %v577_v62 = vmul.f32 10.0, %v496_v56 }
 0x2ea   :  { %v470_v60 = vpop.f32.mrf.mxu0  ;;  %v631_v19 = vmul.f32 20.0, %v496_v56 }
 0x2eb   :  { %v578_v63 = vmul.f32 10.0, %v497_v58  ;;  %v498_v0 = vmul.f32 %v487_v44, %v470_v60  ;;  %580 = vmax.xlane.f32.xlu0 %v579_v59  ;;  %v637_v4 = vmax.f32 %v633_v1, %v634_v61  ;;  %v632_v13 = vmul.f32 20.0, %v497_v58 }
 0x2ec   :  { %v472_v2 = vpop.f32.mrf.mxu0  ;;  %v635_v31 = vadd.f32 %v631_v19, %v534_v51 }
 0x2ed   :  { %v499_v3 = vmul.f32 %v491_v45, %v472_v2  ;;  %v582_v5 = vmax.f32 %v577_v62, %v578_v63  ;;  %v526_v6 = vmul.f32 20.0, %v498_v0  ;;  %v667_v8 = vmul.f32 10.0, %v498_v0 }
 0x2ee   :  { %v476_v7 = vpop.f32.mrf.mxu0  ;;  %v636_v29 = vadd.f32 %v632_v13, %v538_v52 }
 0x2ef   :  { %v527_v9 = vmul.f32 20.0, %v499_v3  ;;  %v668_v10 = vmul.f32 10.0, %v499_v3  ;;  %v500_v11 = vmul.f32 %v487_v44, %v476_v7  ;;  %638 = vmax.xlane.f32.xlu0 %v637_v4  ;;  %583 = vmax.xlane.f32.xlu1 %v582_v5  ;;  %v541_v17 = vadd.f32 %v534_v51, %v526_v6 }
 0x2f0   :  { %v478_v12 = vpop.f32.mrf.mxu0  ;;  %v640_v32 = vmax.f32 %v635_v31, %v636_v29 }
 0x2f1   :  { %v528_v14 = vmul.f32 20.0, %v500_v11  ;;  %v501_v15 = vmul.f32 %v491_v45, %v478_v12  ;;  %v671_v16 = vmax.f32 %v667_v8, %v668_v10  ;;  %v542_v18 = vadd.f32 %v538_v52, %v527_v9 }
 0x2f2   :  { %v669_v20 = vmul.f32 10.0, %v500_v11 }
 0x2f3   :  { %v529_v21 = vmul.f32 20.0, %v501_v15  ;;  %v670_v22 = vmul.f32 10.0, %v501_v15  ;;  %672 = vmax.xlane.f32.xlu1 %v671_v16  ;;  %v545_v23 = vmax.f32 %v541_v17, %v542_v18  ;;  %v543_v25 = vadd.f32 %v534_v51, %v528_v14 }
 0x2f5   :  { %v674_v24 = vmax.f32 %v669_v20, %v670_v22  ;;  %v544_v28 = vadd.f32 %v538_v52, %v529_v21  ;;  %546 = vmax.xlane.f32.xlu0 %v545_v23 }
 0x2f7   :  { %675 = vmax.xlane.f32.xlu1 %v674_v24  ;;  %v548_v30 = vmax.f32 %v543_v25, %v544_v28 }
 0x2f9   :  { %549 = vmax.xlane.f32.xlu0 %v548_v30 }
 0x2fb   :  { %641 = vmax.xlane.f32.xlu1 %v640_v32 }
 0x374   :  { %v581_v33 = vpop.xlane.xlu0 %580 }
 0x375   :  { %v1248_v34 = vsub.f32 %v575_v49, %v581_v33  ;;  %v1250_v35 = vsub.f32 %v576_v54, %v581_v33 }
 0x377   :  { %v589_v36 = vmul.f32 1.442695, %v1248_v34  ;;  %v591_v37 = vmul.f32 1.442695, %v1250_v35 }
 0x378   :  { %v584_v38 = vpop.xlane.xlu1 %583  ;;  %v639_v39 = vpop.xlane.xlu0 %638 }
 0x379   :  { %942 = vpow2.f32 %v589_v36  ;;  %v1254_v40 = vsub.f32 %v577_v62, %v584_v38  ;;  %v1256_v41 = vsub.f32 %v578_v63, %v584_v38  ;;  %v643_v42 = vsub.f32 %v633_v1, %v639_v39 }
 0x37a   :  { %944 = vpow2.f32 %v591_v37  ;;  %v644_v43 = vsub.f32 %v634_v61, %v639_v39 }
 0x37b   :  { %v593_v44 = vmul.f32 1.442695, %v1254_v40  ;;  %v595_v45 = vmul.f32 1.442695, %v1256_v41  ;;  %v647_v26 = vmul.f32 1.442695, %v643_v42 }
 0x37c   :  { %v649_v46 = vmul.f32 1.442695, %v644_v43  ;;  %v673_v47 = vpop.xlane.xlu1 %672 }
 0x37d   :  { %946 = vpow2.f32 %v593_v44  ;;  %v1260_v27 = vsub.f32 %v667_v8, %v673_v47  ;;  %v1262_v48 = vsub.f32 %v668_v10, %v673_v47 }
 0x37e   :  { %948 = vpow2.f32 %v595_v45  ;;  %v547_v51 = vpop.xlane.xlu0 %546 }
 0x37f   :  { %950 = vpow2.f32 %v647_v26  ;;  %v681_v49 = vmul.f32 1.442695, %v1260_v27  ;;  %v683_v50 = vmul.f32 1.442695, %v1262_v48  ;;  %v551_v52 = vsub.f32 %v541_v17, %v547_v51 }
 0x380   :  { %952 = vpow2.f32 %v649_v46  ;;  %v552_v53 = vsub.f32 %v542_v18, %v547_v51  ;;  %v676_v54 = vpop.xlane.xlu1 %675 }
 0x381   :  { %954 = vpow2.f32 %v681_v49  ;;  %v1266_v55 = vsub.f32 %v669_v20, %v676_v54  ;;  %v1268_v56 = vsub.f32 %v670_v22, %v676_v54  ;;  %v555_v57 = vmul.f32 1.442695, %v551_v52 }
 0x382   :  { %956 = vpow2.f32 %v683_v50  ;;  %v557_v58 = vmul.f32 1.442695, %v552_v53  ;;  %v550_v61 = vpop.xlane.xlu0 %549 }
 0x383   :  { %v685_v59 = vmul.f32 1.442695, %v1266_v55  ;;  %v687_v60 = vmul.f32 1.442695, %v1268_v56  ;;  %958 = vpow2.f32 %v555_v57  ;;  %v553_v62 = vsub.f32 %v543_v25, %v550_v61 }
 0x384   :  { %v554_v63 = vsub.f32 %v544_v28, %v550_v61  ;;  %v642_v0 = vpop.xlane.xlu1 %641  ;;  %960 = vpow2.f32 %v557_v58 }
 0x385   :  { %v645_v1 = vsub.f32 %v635_v31, %v642_v0  ;;  %v646_v2 = vsub.f32 %v636_v29, %v642_v0  ;;  %962 = vpow2.f32 %v685_v59  ;;  %v559_v4 = vmul.f32 1.442695, %v553_v62 }
 0x386   :  { %v943_v3 = vpop.eup %942  ;;  %v561_v5 = vmul.f32 1.442695, %v554_v63  ;;  %964 = vpow2.f32 %v687_v60 }
 0x387   :  { %v945_v6 = vpop.eup %944  ;;  %v651_v7 = vmul.f32 1.442695, %v645_v1  ;;  %v653_v8 = vmul.f32 1.442695, %v646_v2  ;;  %966 = vpow2.f32 %v559_v4 }
 0x388   :  { %v597_v9 = vadd.f32 %v945_v6, %v943_v3  ;;  %968 = vpow2.f32 %v561_v5 }
 0x389   :  { %970 = vpow2.f32 %v651_v7 }
 0x38a   :  { %v947_v10 = vpop.eup %946  ;;  %598 = vadd.xlane.f32.xlu0 %v597_v9  ;;  %972 = vpow2.f32 %v653_v8 }
 0x38b   :  { %v949_v11 = vpop.eup %948 }
 0x38c   :  { %v951_v12 = vpop.eup %950  ;;  %v600_v13 = vadd.f32 %v949_v11, %v947_v10 }
 0x38d   :  { %v953_v14 = vpop.eup %952 }
 0x38e   :  { %v955_v15 = vpop.eup %954  ;;  %601 = vadd.xlane.f32.xlu1 %v600_v13  ;;  %v655_v16 = vadd.f32 %v953_v14, %v951_v12 }
 0x38f   :  { %v957_v17 = vpop.eup %956 }
 0x390   :  { %656 = vadd.xlane.f32.xlu0 %v655_v16  ;;  %v689_v18 = vadd.f32 %v957_v17, %v955_v15  ;;  %v959_v19 = vpop.eup %958 }
 0x391   :  { %v961_v20 = vpop.eup %960 }
 0x392   :  { %690 = vadd.xlane.f32.xlu1 %v689_v18  ;;  %v963_v21 = vpop.eup %962  ;;  %v563_v22 = vadd.f32 %v961_v20, %v959_v19 }
 0x393   :  { %v965_v23 = vpop.eup %964 }
 0x394   :  { %v967_v24 = vpop.eup %966  ;;  %564 = vadd.xlane.f32.xlu0 %v563_v22  ;;  %v692_v25 = vadd.f32 %v965_v23, %v963_v21 }
 0x395   :  { %v969_v28 = vpop.eup %968 }
 0x396   :  { %v971_v29 = vpop.eup %970  ;;  %693 = vadd.xlane.f32.xlu1 %v692_v25  ;;  %v566_v30 = vadd.f32 %v969_v28, %v967_v24 }
 0x397   :  { %v973_v31 = vpop.eup %972 }
 0x398   :  { %567 = vadd.xlane.f32.xlu0 %v566_v30  ;;  %v658_v32 = vadd.f32 %v973_v31, %v971_v29 }
 0x39a   :  { %659 = vadd.xlane.f32.xlu1 %v658_v32 }
 0x413   :  { %v599_v33 = vpop.xlane.xlu0 %598 }
 0x414   :  { %974 = vlog2.f32 %v599_v33 }
 0x417   :  { %v602_v36 = vpop.xlane.xlu1 %601 }
 0x419   :  { %v657_v37 = vpop.xlane.xlu0 %656 }
 0x41b   :  { %v691_v38 = vpop.xlane.xlu1 %690 }
 0x41c   :  { %976 = vlog2.f32 %v691_v38 }
 0x41d   :  { %978 = vlog2.f32 %v602_v36  ;;  %v565_v39 = vpop.xlane.xlu0 %564 }
 0x41e   :  { %980 = vrcp.f32 %v657_v37 }
 0x41f   :  { %982 = vrcp.f32 %v565_v39  ;;  %v694_v42 = vpop.xlane.xlu1 %693 }
 0x420   :  { %984 = vlog2.f32 %v694_v42 }
 0x421   :  { %v568_v43 = vpop.xlane.xlu0 %567  ;;  %v975_v45 = vpop.eup %974 }
 0x422   :  { %986 = vrcp.f32 %v568_v43  ;;  %v604_v26 = vmul.f32 0.6931472, %v975_v45 }
 0x423   :  { %v660_v44 = vpop.xlane.xlu1 %659 }
 0x424   :  { %988 = vrcp.f32 %v660_v44  ;;  %v607_v52 = vsub.f32 %v1248_v34, %v604_v26  ;;  %v608_v57 = vsub.f32 %v1250_v35, %v604_v26 }
 0x429   :  { %v977_v46 = vpop.eup %976 }
 0x42a   :  { %v979_v47 = vpop.eup %978  ;;  %v696_v49 = vmul.f32 0.6931472, %v977_v46 }
 0x42b   :  { %v981_v50 = vpop.eup %980  ;;  %v606_v58 = vmul.f32 0.6931472, %v979_v47 }
 0x42c   :  { %v983_v51 = vpop.eup %982  ;;  %v699_v53 = vsub.f32 %v1260_v27, %v696_v49  ;;  %v700_v54 = vsub.f32 %v1262_v48, %v696_v49  ;;  %v663_v62 = vmul.f32 %v981_v50, %v951_v12  ;;  %v664_v63 = vmul.f32 %v981_v50, %v953_v14 }
 0x42d   :  { %v571_v59 = vmul.f32 %v983_v51, %v959_v19  ;;  %v572_v60 = vmul.f32 %v983_v51, %v961_v20  ;;  %v985_v61 = vpop.eup %984  ;;  %v609_v34 = vsub.f32 %v1254_v40, %v606_v58  ;;  %v610_v35 = vsub.f32 %v1256_v41, %v606_v58 }
 0x42e   :  { %v698_v0 = vmul.f32 0.6931472, %v985_v61  ;;  %v703_v4 = vmul.f32 %v699_v53, %v663_v62  ;;  %v704_v5 = vmul.f32 %v700_v54, %v664_v63 }
 0x42f   :  { %v611_v1 = vmul.f32 %v607_v52, %v571_v59  ;;  %v612_v2 = vmul.f32 %v608_v57, %v572_v60  ;;  %v987_v3 = vpop.eup %986 }
 0x430   :  { %v573_v6 = vmul.f32 %v987_v3, %v967_v24  ;;  %v574_v27 = vmul.f32 %v987_v3, %v969_v28  ;;  %v701_v48 = vsub.f32 %v1266_v55, %v698_v0  ;;  %v707_v12 = vadd.f32 %v704_v5, %v703_v4 }
 0x431   :  { %v989_v7 = vpop.eup %988  ;;  %v615_v9 = vadd.f32 %v612_v2, %v611_v1  ;;  %v702_v15 = vsub.f32 %v1268_v56, %v698_v0 }
 0x432   :  { %v613_v8 = vmul.f32 %v609_v34, %v573_v6  ;;  %v665_v10 = vmul.f32 %v989_v7, %v971_v29  ;;  %v666_v11 = vmul.f32 %v989_v7, %v973_v31  ;;  %v614_v13 = vmul.f32 %v610_v35, %v574_v27 }
 0x434   :  { %v616_v14 = vadd.f32 %v615_v9, %v613_v8  ;;  %v705_v16 = vmul.f32 %v701_v48, %v665_v10  ;;  %v706_v18 = vmul.f32 %v702_v15, %v666_v11 }
 0x436   :  { %v617_v17 = vadd.f32 %v616_v14, %v614_v13  ;;  %v708_v40 = vadd.f32 %v707_v12, %v705_v16 }
 0x438   :  { %618 = vadd.xlane.f32.xlu0 %v617_v17  ;;  %v709_v19 = vadd.f32 %v708_v40, %v706_v18 }
 0x43a   :  { %710 = vadd.xlane.f32.xlu1 %v709_v19 }
 0x43b   :  { %1101 = shalt.err (!%p1098_p1)
}
 0x43c   :  { %745 = dma.vmem_to_hbm [thread:$0]  %s740_s7, 1024, %s1298_s9, [#allocation15], %s1142_s14, %s1142_s14, %s1143_s15  }
 0x43d   :  { %s1148_s14 = smov [#allocation13]  }
 0x43e   :  { %s730_s15 = sshll.u32 %s1148_s14, 4  ;;  %s731_s15 = int_to_ptr.vmem [resolvable:$true] %s730_s15 }
 0x43f   :  { %s1110_s24 = scalar_lea.vmem %s731_s15, 128  ;;  %p1115_p3 = scmp.lt.s32.totalorder %s731_s15, %s731_s15 }
 0x440   :  { %p1111_p2 = scmp.ne.s32.totalorder %s731_s15, %s1110_s24  ;;  %p1116_p4 = scmp.lt.s32.totalorder %s1110_s24, %s1110_s24 }
 0x442   :  { %p1117_p5 = por %p1116_p4, %p1115_p3 }
 0x444   :  { %p1118_p6 = pnand %p1117_p5, %p1111_p2 }
 0x4c1   :  { %v619_v41 = vpop.xlane.xlu0 %618 }
 0x4c2   :  { %v620_v55 = vrot.slane %v619_v41, 4 }
 0x4c3   :  { %v711_v56 = vpop.xlane.xlu1 %710 }
 0x4c4   :  { %v621_v20 = vadd.f32 %v620_v55, %v619_v41  ;;  %v712_v21 = vrot.slane %v711_v56, 4 }
 0x4c6   :  { %v622_v22 = vrot.slane %v621_v20, 2  ;;  %v713_v23 = vadd.f32 %v712_v21, %v711_v56 }
 0x4c8   :  { %v714_v24 = vrot.slane %v713_v23, 2  ;;  %v623_v25 = vadd.f32 %v622_v22, %v621_v20 }
 0x4ca   :  { %v715_v28 = vadd.f32 %v714_v24, %v713_v23  ;;  %v624_v29 = vrot.slane %v623_v25, 1 }
 0x4cc   :  { %v625_v30 = vadd.f32 %v624_v29, %v623_v25  ;;  %v716_v31 = vrot.slane %v715_v28, 1 }
 0x4ce   :  { %921 = vpush %v625_v30  ;;  %v717_v32 = vadd.f32 %v716_v31, %v715_v28 }
 0x4d0   :  { %923 = vpush %v717_v32 }
 0x4ff   :  { %s922_s20 = spop %921 }
 0x500   :  { %s627_s21 = ssub.f32 0.0, %s922_s20 }
 0x501   :  { %s924_s22 = spop %923 }
 0x502   :  { %s719_s9 = ssub.f32 0.0, %s924_s22 }
 0x504   :  { %s720_s23 = sadd.f32 %s719_s9, %s627_s21 }
 0x506   :  { %v721_v33 = vstv %s720_s23 }
 0x507   :  { %723 = vst [vmem:[#allocation13] sm:$0xff] %v721_v33 }
 0x508   :  { %1121 = shalt.err (!%p1118_p6)
}
 0x509   :  { %733 = dma.vmem_to_hbm [thread:$0]  %s731_s15, 128, %s1297_s8, [#allocation6]  }
 0x50a   :  { %1136 = dma.done.wait [#allocation6], 128  }
 0x50b   :  { %1137 = vsyncadd [#allocation6], 4294967168 }
 0x50c   :  { %1138 = dma.done.wait [#allocation15], 1024  }
 0x50d   :  { %1139 = vsyncadd [#allocation15], 4294966272 }
 0x50e   :  { %752 = vsyncpa [#allocation5], 1 }
 0x50f   :  { %753 = vsyncpa [#allocation8], 1 }
 0x510   :  { %754 = vsyncpa [#allocation11], 1 }
 0x511   :  { %755 = vsyncpa [#allocation6], 1 }
 0x512   :  { %756 = vsyncpa [#allocation15], 1 }

</bundles_post_ra>
